<compile_context>
chip_gen: v6e
topology: v6e:2x2x1
jax: 0.10.0
libtpu: 0.0.40
codegen_flags: <defaults>
</compile_context>

<pallas_src>
import math
import numpy as np
import jax
import jax.numpy as jnp
from jax.experimental import pallas as pl
from jax.experimental.pallas import tpu as pltpu


# --------------------------- host-side helpers ------------------------------

def _nearest_expand_matrix_t(th_out, ow, th_in, w_in):
    """E^T with E^T[r, R] = 1 where flattened input row r is the nearest-neighbour
    source of flattened output row R (F.interpolate(mode='nearest'):
    src = floor(dst * in / out))."""
    R = np.arange(th_out * ow)
    rh, rw = R // ow, R % ow
    src = (rh * th_in // th_out) * w_in + (rw * w_in // ow)
    e_t = np.zeros((th_in * w_in, th_out * ow), dtype=np.float32)
    e_t[src, R] = 1.0
    return e_t


def _vmem_bytes(th, descs, OH, OW, C, in_isz, out_isz, const_mult=2):
    """Pessimistic working-set estimate: 2x buffering for pipelined blocks, const_mult
    for the grid-invariant constants (2 if the Buffered(1) request is not honoured)."""
    out_rows = th * OW
    total = 2 * out_rows * C * out_isz
    for d in descs:
        rows_in = (th * d["h"] // OH) * d["w"]
        total += 2 * rows_in * d["cin"] * in_isz
        if d["has_conv"]:
            total += const_mult * (C * d["cin"] * in_isz + C * 4)
        if d["resize"]:
            total += const_mult * rows_in * out_rows * in_isz
    return total


def _choose_th(OH, OW, descs, C, in_isz, out_isz, vmem_budget=24 << 20):
    """Output-H tile size: divides OH, integer resize ratio per tile, every block's
    flattened row count is a multiple of 128 (lane-dense) or the full extent, and the
    working set fits the VMEM budget (prefer the largest tile that fits)."""
    candidates = [OH]                                  # full-spatial tile always legal
    integer_scale, scales = True, []
    for d in descs:
        if (d["h"], d["w"]) == (OH, OW):
            continue
        if OH % d["h"] or OW % d["w"]:
            integer_scale = False
            break
        scales.append(OH // d["h"])
    if integer_scale:
        lcm = 1
        for s in scales:
            lcm = lcm * s // math.gcd(lcm, s)
        for th in range(lcm, OH, lcm):
            if OH % th or (th * OW) % 128:
                continue
            if all(((th * d["h"] // OH) * d["w"]) % 128 == 0 for d in descs):
                candidates.append(th)
    fitting = [t for t in candidates
               if _vmem_bytes(t, descs, OH, OW, C, in_isz, out_isz) <= vmem_budget]
    if fitting:
        return max(fitting)
    # TODO(synk): nothing fits the budget (huge E at the full tile) — would need an
    # OW split or a non-MXU resize; fall back to the smallest-footprint candidate.
    return min(candidates, key=lambda t: _vmem_bytes(t, descs, OH, OW, C, in_isz, out_isz))


# ------------------------------ fused kernel --------------------------------

def _make_fused_kernel(descs, has_ew):
    """Args: [softmax weights (SMEM) if has_ew], then per input: x, [w, b], [E^T];
    then out. Blocks are channels-first: x (1, Cin, rows_in), out (1, C, TH*OW)."""
    def kernel(*refs):
        out_ref = refs[-1]                                 # (1, C, TH*OW)
        pos = 0
        ew_ref = None
        if has_ew:
            ew_ref, pos = refs[0], 1
        acc = None
        for k, d in enumerate(descs):
            x = refs[pos][0]                               # (Cin, rows_in), input dtype
            pos += 1
            if d["has_conv"]:                              # 1x1 conv == channel matmul
                w = refs[pos][...]                         # (C, Cin), softmax wt folded in
                b = refs[pos + 1][...]                     # (C, 1) f32, softmax wt folded in
                pos += 2
                x = jnp.dot(w, x, preferred_element_type=jnp.float32) + b
            if d["resize"]:                                # nearest resize == 0/1 matmul
                e = refs[pos][...]                         # (rows_in, TH*OW)
                pos += 1
                x = jnp.dot(x.astype(e.dtype), e, preferred_element_type=jnp.float32)
            if not d["has_conv"] and not d["resize"]:      # pass-through: weight not folded
                x = x.astype(jnp.float32) * ew_ref[k]
            acc = x if acc is None else acc + x            # f32 accumulation in vregs
        out_ref[0] = acc.astype(out_ref.dtype)
    return kernel


# ------------------------------- forward ------------------------------------

def init_fpn_combine_params(key, feature_info, fpn_channels, inputs_offsets):
    params = {"edge_weights": jnp.ones((len(inputs_offsets),), jnp.float32),
              "resample": {}}
    for offset in inputs_offsets:
        cin = feature_info[offset]["num_chs"]
        if cin != fpn_channels:
            key, k1, k2 = jax.random.split(key, 3)
            bound = 1.0 / np.sqrt(cin)                     # torch conv default init (k=1)
            w = jax.random.uniform(k1, (fpn_channels, cin), jnp.float32, -bound, bound)
            b = jax.random.uniform(k2, (fpn_channels,), jnp.float32, -bound, bound)
            params["resample"][offset] = {"w": w, "b": b}
    return params


def fpn_combine_forward(params, x_list, feature_info, fpn_channels,
                        inputs_offsets, output_size):
    """x_list: NCHW arrays (PyTorch convention). Returns NCHW. One fused pallas_call."""
    OH, OW = int(output_size[0]), int(output_size[1])
    C = int(fpn_channels)
    cdt = x_list[inputs_offsets[0]].dtype                  # compute dtype follows the input
    N = x_list[inputs_offsets[0]].shape[0]

    descs = []
    for offset in inputs_offsets:
        _, Cin, H, W = x_list[offset].shape
        if H > OH and W > OW:
            # TODO(synk): max-pool downsample branch of ResampleFeatureMap not implemented.
            raise NotImplementedError("downsample path not implemented")
        descs.append({"offset": offset, "h": H, "w": W, "cin": Cin,
                      "has_conv": Cin != C, "resize": (H, W) != (OH, OW)})

    in_isz = cdt.itemsize
    TH = _choose_th(OH, OW, descs, C, in_isz, in_isz)
    n_ht = OH // TH
    out_rows = TH * OW
    est_vmem = _vmem_bytes(TH, descs, OH, OW, C, in_isz, in_isz)

    ew = jax.nn.softmax(params["edge_weights"].astype(jnp.float32), axis=0)
    has_passthrough = any(not d["has_conv"] and not d["resize"] for d in descs)

    def build(single_buffer_consts):
        def const_spec(block_shape):                        # grid-invariant operand
            if single_buffer_consts:
                return pl.BlockSpec(block_shape, lambda n, i: (0, 0),
                                    pipeline_mode=pl.Buffered(1))
            return pl.BlockSpec(block_shape, lambda n, i: (0, 0))

        args, in_specs = [], []
        if has_passthrough:
            args.append(ew)                                 # softmax scalars -> SMEM
            in_specs.append(pl.BlockSpec(memory_space=pltpu.SMEM))
        for k, d in enumerate(descs):
            rows_in = (TH * d["h"] // OH) * d["w"]
            # NCHW -> (N, C, H*W) is a free contiguous reshape (no transpose).
            args.append(x_list[d["offset"]].reshape(N, d["cin"], d["h"] * d["w"]))
            in_specs.append(pl.BlockSpec((1, d["cin"], rows_in), lambda n, i: (n, 0, i)))
            if d["has_conv"]:                               # fold softmax weight into W, b
                p = params["resample"][d["offset"]]
                args.append((p["w"] * ew[k]).astype(cdt))
                in_specs.append(const_spec((C, d["cin"])))
                args.append((p["b"] * ew[k]).reshape(C, 1).astype(jnp.float32))
                in_specs.append(const_spec((C, 1)))
            if d["resize"]:
                e_t = jnp.asarray(
                    _nearest_expand_matrix_t(TH, OW, TH * d["h"] // OH, d["w"]))
                if not d["has_conv"]:
                    e_t = e_t * ew[k]                       # fold softmax weight into E
                args.append(e_t.astype(cdt))
                in_specs.append(const_spec((rows_in, out_rows)))

        return pl.pallas_call(
            _make_fused_kernel(descs, has_passthrough),
            out_shape=jax.ShapeDtypeStruct((N, C, OH * OW), cdt),
            grid=(N, n_ht),
            in_specs=in_specs,
            out_specs=pl.BlockSpec((1, C, out_rows), lambda n, i: (n, 0, i)),
            compiler_params=pltpu.CompilerParams(
                dimension_semantics=("parallel", "parallel"),
                vmem_limit_bytes=int(max(32 << 20, min(2 * est_vmem, 64 << 20)))),
        )(*args)

    try:
        out_flat = build(single_buffer_consts=True)
    except Exception:   # runtime without Buffered(1) support: fall back to default buffering
        out_flat = build(single_buffer_consts=False)

    return out_flat.reshape(N, C, OH, OW)                   # free reshape, stays NCHW


# ------------------------------ reference -----------------------------------

def _nearest_resize_nchw(x, out_hw):
    H, W = x.shape[2], x.shape[3]
    OH, OW = out_hw
    hi = (np.arange(OH) * H // OH).astype(np.int32)
    wi = (np.arange(OW) * W // OW).astype(np.int32)
    return x[:, :, hi][:, :, :, wi]


def fpn_combine_reference(params, x_list, fpn_channels, inputs_offsets, output_size):
    nodes = []
    for offset in inputs_offsets:
        xn = x_list[offset].astype(jnp.float32)
        if xn.shape[1] != fpn_channels:
            p = params["resample"][offset]
            xn = jnp.einsum("nchw,dc->ndhw", xn, p["w"]) + p["b"][None, :, None, None]
        if (xn.shape[2], xn.shape[3]) != tuple(output_size):
            xn = _nearest_resize_nchw(xn, output_size)
        nodes.append(xn)
    w = jax.nn.softmax(params["edge_weights"], axis=0)
    return sum(w[i] * nodes[i] for i in range(len(nodes)))


# --------------------------------- main --------------------------------------

if __name__ == "__main__":
    key = jax.random.PRNGKey(0)

    # Synthetic BiFPN node exercising all three resample paths:
    #   input 0: 8 ch @ 8x8 -> 1x1 conv to fpn_channels
    #   input 1: 4 ch @ 4x4 -> nearest 2x upsample
    #   input 2: 4 ch @ 8x8 -> pass-through
    feature_info = [{"num_chs": 8, "size": (8, 8)},
                    {"num_chs": 4, "size": (4, 4)},
                    {"num_chs": 4, "size": (8, 8)}]
    fpn_channels = 4
    inputs_offsets = (0, 1, 2)
    output_size = (8, 8)
    batch = 2

    key, kp, kw, kx0, kx1, kx2 = jax.random.split(key, 6)
    params = init_fpn_combine_params(kp, feature_info, fpn_channels, inputs_offsets)
    params["edge_weights"] = jax.random.normal(kw, (len(inputs_offsets),), jnp.float32)

    # inputs are NCHW, like the PyTorch module
    x = [jax.random.normal(kx0, (batch, 8, 8, 8), jnp.float32),
         jax.random.normal(kx1, (batch, 4, 4, 4), jnp.float32),
         jax.random.normal(kx2, (batch, 4, 8, 8), jnp.float32)]

    ref = fpn_combine_reference(params, x, fpn_channels, inputs_offsets, output_size)

    # f32 path: exact, tight tolerance.
    out = fpn_combine_forward(params, x, feature_info, fpn_channels,
                              inputs_offsets, output_size)
    out = jax.block_until_ready(out)
    assert out.shape == (batch, fpn_channels, *output_size)
    np.testing.assert_allclose(np.asarray(out), np.asarray(ref), rtol=1e-5, atol=1e-5)

    # bf16 fast path (native MXU dtype on v5e/v6e/v7x): loose tolerance vs the f32 ref.
    x_bf16 = [a.astype(jnp.bfloat16) for a in x]
    out_bf16 = fpn_combine_forward(params, x_bf16, feature_info, fpn_channels,
                                   inputs_offsets, output_size)
    out_bf16 = jax.block_until_ready(out_bf16)
    assert out_bf16.dtype == jnp.bfloat16
    np.testing.assert_allclose(np.asarray(out_bf16.astype(jnp.float32)),
                               np.asarray(ref), rtol=5e-2, atol=1e-1)

    print("KERNEL_OK")
</pallas_src>

<mosaic_0001>
module attributes {stable_mosaic.version = 11 : i64} {
  func.func @kernel(%arg0: i32, %arg1: i32, %arg2: memref<3xf32, #tpu.memory_space<smem>>, %arg3: memref<1x8x64xf32, #tpu.memory_space<vmem>>, %arg4: memref<4x8xf32, #tpu.memory_space<vmem>>, %arg5: memref<4x1xf32, #tpu.memory_space<vmem>>, %arg6: memref<1x4x16xf32, #tpu.memory_space<vmem>>, %arg7: memref<16x64xf32, #tpu.memory_space<vmem>>, %arg8: memref<1x4x64xf32, #tpu.memory_space<vmem>>, %arg9: memref<1x4x64xf32, #tpu.memory_space<vmem>>) attributes {dimension_semantics = [#tpu.dimension_semantics<parallel>, #tpu.dimension_semantics<parallel>], iteration_bounds = array<i64: 2, 1>, scalar_prefetch = 0 : i64, scratch_operands = 0 : i64, tpu.core_type = #tpu.core_type<tc>, window_params = [{transform_indices = @transform_0, window_bounds = array<i64: 3>}, {transform_indices = @transform_1, window_bounds = array<i64: 1, 8, 64>}, {pipeline_mode = #tpu.pipeline_mode<synchronous>, transform_indices = @transform_2, window_bounds = array<i64: 4, 8>}, {pipeline_mode = #tpu.pipeline_mode<synchronous>, transform_indices = @transform_3, window_bounds = array<i64: 4, 1>}, {transform_indices = @transform_4, window_bounds = array<i64: 1, 4, 16>}, {pipeline_mode = #tpu.pipeline_mode<synchronous>, transform_indices = @transform_5, window_bounds = array<i64: 16, 64>}, {transform_indices = @transform_6, window_bounds = array<i64: 1, 4, 64>}, {transform_indices = @transform_7, window_bounds = array<i64: 1, 4, 64>}]} {
    %c0 = arith.constant 0 : index
    %c0_0 = arith.constant 0 : index
    %c0_1 = arith.constant 0 : index
    %0 = vector.load %arg3[%c0, %c0_0, %c0_1] : memref<1x8x64xf32, #tpu.memory_space<vmem>>, vector<1x8x64xf32>
    %1 = vector.shape_cast %0 : vector<1x8x64xf32> to vector<8x64xf32>
    %c0_2 = arith.constant 0 : index
    %c0_3 = arith.constant 0 : index
    %2 = vector.load %arg4[%c0_2, %c0_3] : memref<4x8xf32, #tpu.memory_space<vmem>>, vector<4x8xf32>
    %c0_4 = arith.constant 0 : index
    %c0_5 = arith.constant 0 : index
    %3 = vector.load %arg5[%c0_4, %c0_5] : memref<4x1xf32, #tpu.memory_space<vmem>>, vector<4x1xf32>
    %cst = arith.constant dense<0.000000e+00> : vector<4x64xf32>
    %4 = tpu.matmul %2, %1, %cst {dimension_numbers = #tpu.dot_dimension_numbers<[1], [0], [0], [1], [0, 0, 1, 1], [], []>} : vector<4x8xf32>, vector<8x64xf32>, vector<4x64xf32> -> vector<4x64xf32>
    %5 = vector.broadcast %3 : vector<4x1xf32> to vector<4x64xf32>
    %6 = arith.addf %4, %5 : vector<4x64xf32>
    %c0_6 = arith.constant 0 : index
    %c0_7 = arith.constant 0 : index
    %c0_8 = arith.constant 0 : index
    %7 = vector.load %arg6[%c0_6, %c0_7, %c0_8] : memref<1x4x16xf32, #tpu.memory_space<vmem>>, vector<1x4x16xf32>
    %8 = vector.shape_cast %7 : vector<1x4x16xf32> to vector<4x16xf32>
    %c0_9 = arith.constant 0 : index
    %c0_10 = arith.constant 0 : index
    %9 = vector.load %arg7[%c0_9, %c0_10] : memref<16x64xf32, #tpu.memory_space<vmem>>, vector<16x64xf32>
    %cst_11 = arith.constant dense<0.000000e+00> : vector<4x64xf32>
    %10 = tpu.matmul %8, %9, %cst_11 {dimension_numbers = #tpu.dot_dimension_numbers<[1], [0], [0], [1], [0, 0, 1, 1], [], []>} : vector<4x16xf32>, vector<16x64xf32>, vector<4x64xf32> -> vector<4x64xf32>
    %11 = arith.addf %6, %10 : vector<4x64xf32>
    %c0_12 = arith.constant 0 : index
    %c0_13 = arith.constant 0 : index
    %c0_14 = arith.constant 0 : index
    %12 = vector.load %arg8[%c0_12, %c0_13, %c0_14] : memref<1x4x64xf32, #tpu.memory_space<vmem>>, vector<1x4x64xf32>
    %13 = vector.shape_cast %12 : vector<1x4x64xf32> to vector<4x64xf32>
    %c2 = arith.constant 2 : index
    %14 = memref.load %arg2[%c2] : memref<3xf32, #tpu.memory_space<smem>>
    %15 = vector.broadcast %14 : f32 to vector<4x64xf32>
    %16 = arith.mulf %13, %15 : vector<4x64xf32>
    %17 = arith.addf %11, %16 : vector<4x64xf32>
    %c0_15 = arith.constant 0 : index
    %c0_16 = arith.constant 0 : index
    %c0_17 = arith.constant 0 : index
    %18 = vector.load %arg9[%c0_15, %c0_16, %c0_17] : memref<1x4x64xf32, #tpu.memory_space<vmem>>, vector<1x4x64xf32>
    %19 = vector.shape_cast %18 : vector<1x4x64xf32> to vector<4x64xf32>
    %20 = vector.shape_cast %17 : vector<4x64xf32> to vector<1x4x64xf32>
    tpu.vector_store %arg9[%c0_15, %c0_16, %c0_17], %20 {strides = array<i32>} : memref<1x4x64xf32, #tpu.memory_space<vmem>>, vector<1x4x64xf32>,
    return
  }
  func.func @transform_0(%arg0: i32, %arg1: i32) -> i32 {
    %c0_i32 = arith.constant 0 : i32
    %c0_i32_0 = arith.constant 0 : i32
    return %c0_i32 : i32
  }
  func.func @transform_1(%arg0: i32, %arg1: i32) -> (i32, i32, i32) {
    %c0_i32 = arith.constant 0 : i32
    %c0_i32_0 = arith.constant 0 : i32
    return %arg0, %c0_i32, %arg1 : i32, i32, i32
  }
  func.func @transform_2(%arg0: i32, %arg1: i32) -> (i32, i32) {
    %c0_i32 = arith.constant 0 : i32
    %c0_i32_0 = arith.constant 0 : i32
    %c0_i32_1 = arith.constant 0 : i32
    return %c0_i32, %c0_i32_0 : i32, i32
  }
  func.func @transform_3(%arg0: i32, %arg1: i32) -> (i32, i32) {
    %c0_i32 = arith.constant 0 : i32
    %c0_i32_0 = arith.constant 0 : i32
    %c0_i32_1 = arith.constant 0 : i32
    return %c0_i32, %c0_i32_0 : i32, i32
  }
  func.func @transform_4(%arg0: i32, %arg1: i32) -> (i32, i32, i32) {
    %c0_i32 = arith.constant 0 : i32
    %c0_i32_0 = arith.constant 0 : i32
    return %arg0, %c0_i32, %arg1 : i32, i32, i32
  }
  func.func @transform_5(%arg0: i32, %arg1: i32) -> (i32, i32) {
    %c0_i32 = arith.constant 0 : i32
    %c0_i32_0 = arith.constant 0 : i32
    %c0_i32_1 = arith.constant 0 : i32
    return %c0_i32, %c0_i32_0 : i32, i32
  }
  func.func @transform_6(%arg0: i32, %arg1: i32) -> (i32, i32, i32) {
    %c0_i32 = arith.constant 0 : i32
    %c0_i32_0 = arith.constant 0 : i32
    return %arg0, %c0_i32, %arg1 : i32, i32, i32
  }
  func.func @transform_7(%arg0: i32, %arg1: i32) -> (i32, i32, i32) {
    %c0_i32 = arith.constant 0 : i32
    %c0_i32_0 = arith.constant 0 : i32
    return %arg0, %c0_i32, %arg1 : i32, i32, i32
  }
}

module attributes {stable_mosaic.version = 11 : i64} {
  func.func @kernel(%arg0: i32, %arg1: i32, %arg2: memref<3xf32, #tpu.memory_space<smem>>, %arg3: memref<1x8x64xf32, #tpu.memory_space<vmem>>, %arg4: memref<4x8xf32, #tpu.memory_space<vmem>>, %arg5: memref<4x1xf32, #tpu.memory_space<vmem>>, %arg6: memref<1x4x16xf32, #tpu.memory_space<vmem>>, %arg7: memref<16x64xf32, #tpu.memory_space<vmem>>, %arg8: memref<1x4x64xf32, #tpu.memory_space<vmem>>, %arg9: memref<1x4x64xf32, #tpu.memory_space<vmem>>) attributes {dimension_semantics = [#tpu.dimension_semantics<parallel>, #tpu.dimension_semantics<parallel>], iteration_bounds = array<i64: 2, 1>, scalar_prefetch = 0 : i64, scratch_operands = 0 : i64, tpu.core_type = #tpu.core_type<tc>, window_params = [{transform_indices = @transform_0, window_bounds = array<i64: 3>}, {transform_indices = @transform_1, window_bounds = array<i64: 1, 8, 64>}, {pipeline_mode = #tpu.pipeline_mode<synchronous>, transform_indices = @transform_2, window_bounds = array<i64: 4, 8>}, {pipeline_mode = #tpu.pipeline_mode<synchronous>, transform_indices = @transform_3, window_bounds = array<i64: 4, 1>}, {transform_indices = @transform_4, window_bounds = array<i64: 1, 4, 16>}, {pipeline_mode = #tpu.pipeline_mode<synchronous>, transform_indices = @transform_5, window_bounds = array<i64: 16, 64>}, {transform_indices = @transform_6, window_bounds = array<i64: 1, 4, 64>}, {transform_indices = @transform_7, window_bounds = array<i64: 1, 4, 64>}]} {
    %c0 = arith.constant 0 : index
    %c0_0 = arith.constant 0 : index
    %c0_1 = arith.constant 0 : index
    %0 = vector.load %arg3[%c0, %c0_0, %c0_1] : memref<1x8x64xf32, #tpu.memory_space<vmem>>, vector<1x8x64xf32>
    %1 = vector.shape_cast %0 : vector<1x8x64xf32> to vector<8x64xf32>
    %c0_2 = arith.constant 0 : index
    %c0_3 = arith.constant 0 : index
    %2 = vector.load %arg4[%c0_2, %c0_3] : memref<4x8xf32, #tpu.memory_space<vmem>>, vector<4x8xf32>
    %c0_4 = arith.constant 0 : index
    %c0_5 = arith.constant 0 : index
    %3 = vector.load %arg5[%c0_4, %c0_5] : memref<4x1xf32, #tpu.memory_space<vmem>>, vector<4x1xf32>
    %cst = arith.constant dense<0.000000e+00> : vector<4x64xf32>
    %4 = tpu.matmul %2, %1, %cst {dimension_numbers = #tpu.dot_dimension_numbers<[1], [0], [0], [1], [0, 0, 1, 1], [], []>} : vector<4x8xf32>, vector<8x64xf32>, vector<4x64xf32> -> vector<4x64xf32>
    %5 = vector.broadcast %3 : vector<4x1xf32> to vector<4x64xf32>
    %6 = arith.addf %4, %5 : vector<4x64xf32>
    %c0_6 = arith.constant 0 : index
    %c0_7 = arith.constant 0 : index
    %c0_8 = arith.constant 0 : index
    %7 = vector.load %arg6[%c0_6, %c0_7, %c0_8] : memref<1x4x16xf32, #tpu.memory_space<vmem>>, vector<1x4x16xf32>
    %8 = vector.shape_cast %7 : vector<1x4x16xf32> to vector<4x16xf32>
    %c0_9 = arith.constant 0 : index
    %c0_10 = arith.constant 0 : index
    %9 = vector.load %arg7[%c0_9, %c0_10] : memref<16x64xf32, #tpu.memory_space<vmem>>, vector<16x64xf32>
    %cst_11 = arith.constant dense<0.000000e+00> : vector<4x64xf32>
    %10 = tpu.matmul %8, %9, %cst_11 {dimension_numbers = #tpu.dot_dimension_numbers<[1], [0], [0], [1], [0, 0, 1, 1], [], []>} : vector<4x16xf32>, vector<16x64xf32>, vector<4x64xf32> -> vector<4x64xf32>
    %11 = arith.addf %6, %10 : vector<4x64xf32>
    %c0_12 = arith.constant 0 : index
    %c0_13 = arith.constant 0 : index
    %c0_14 = arith.constant 0 : index
    %12 = vector.load %arg8[%c0_12, %c0_13, %c0_14] : memref<1x4x64xf32, #tpu.memory_space<vmem>>, vector<1x4x64xf32>
    %13 = vector.shape_cast %12 : vector<1x4x64xf32> to vector<4x64xf32>
    %c2 = arith.constant 2 : index
    %14 = memref.load %arg2[%c2] : memref<3xf32, #tpu.memory_space<smem>>
    %15 = vector.broadcast %14 : f32 to vector<4x64xf32>
    %16 = arith.mulf %13, %15 : vector<4x64xf32>
    %17 = arith.addf %11, %16 : vector<4x64xf32>
    %c0_15 = arith.constant 0 : index
    %c0_16 = arith.constant 0 : index
    %c0_17 = arith.constant 0 : index
    %18 = vector.load %arg9[%c0_15, %c0_16, %c0_17] : memref<1x4x64xf32, #tpu.memory_space<vmem>>, vector<1x4x64xf32>
    %19 = vector.shape_cast %18 : vector<1x4x64xf32> to vector<4x64xf32>
    %20 = vector.shape_cast %17 : vector<4x64xf32> to vector<1x4x64xf32>
    tpu.vector_store %arg9[%c0_15, %c0_16, %c0_17], %20 {strides = array<i32>} : memref<1x4x64xf32, #tpu.memory_space<vmem>>, vector<1x4x64xf32>,
    return
  }
  func.func @transform_0(%arg0: i32, %arg1: i32) -> i32 {
    %c0_i32 = arith.constant 0 : i32
    %c0_i32_0 = arith.constant 0 : i32
    return %c0_i32 : i32
  }
  func.func @transform_1(%arg0: i32, %arg1: i32) -> (i32, i32, i32) {
    %c0_i32 = arith.constant 0 : i32
    %c0_i32_0 = arith.constant 0 : i32
    return %arg0, %c0_i32, %arg1 : i32, i32, i32
  }
  func.func @transform_2(%arg0: i32, %arg1: i32) -> (i32, i32) {
    %c0_i32 = arith.constant 0 : i32
    %c0_i32_0 = arith.constant 0 : i32
    %c0_i32_1 = arith.constant 0 : i32
    return %c0_i32, %c0_i32_0 : i32, i32
  }
  func.func @transform_3(%arg0: i32, %arg1: i32) -> (i32, i32) {
    %c0_i32 = arith.constant 0 : i32
    %c0_i32_0 = arith.constant 0 : i32
    %c0_i32_1 = arith.constant 0 : i32
    return %c0_i32, %c0_i32_0 : i32, i32
  }
  func.func @transform_4(%arg0: i32, %arg1: i32) -> (i32, i32, i32) {
    %c0_i32 = arith.constant 0 : i32
    %c0_i32_0 = arith.constant 0 : i32
    return %arg0, %c0_i32, %arg1 : i32, i32, i32
  }
  func.func @transform_5(%arg0: i32, %arg1: i32) -> (i32, i32) {
    %c0_i32 = arith.constant 0 : i32
    %c0_i32_0 = arith.constant 0 : i32
    %c0_i32_1 = arith.constant 0 : i32
    return %c0_i32, %c0_i32_0 : i32, i32
  }
  func.func @transform_6(%arg0: i32, %arg1: i32) -> (i32, i32, i32) {
    %c0_i32 = arith.constant 0 : i32
    %c0_i32_0 = arith.constant 0 : i32
    return %arg0, %c0_i32, %arg1 : i32, i32, i32
  }
  func.func @transform_7(%arg0: i32, %arg1: i32) -> (i32, i32, i32) {
    %c0_i32 = arith.constant 0 : i32
    %c0_i32_0 = arith.constant 0 : i32
    return %arg0, %c0_i32, %arg1 : i32, i32, i32
  }
}

</mosaic_0001>

<bundles_post_ra>
// kernel: tpu_custom_call.1
= control target key start
LH: loop header
LB: loop body
LE: loop exit
PB: predicated region body
PF: predicated region fallthrough
CT: control target
= control target key end

     0   :  { %s1318_s0 = inlined_call_operand.hbm [shape: f32[3], index: 0, kind: input, shape index: {}]   ;;  %s1319_s1 = inlined_call_operand.hbm [shape: f32[2,8,64], index: 1, kind: input, shape index: {}]   ;;  %s1320_s2 = inlined_call_operand.vmem [shape: f32[4,8], index: 2, kind: input, shape index: {}]   ;;  %s1321_s3 = inlined_call_operand.vmem [shape: f32[4,1], index: 3, kind: input, shape index: {}]   ;;  %s1322_s4 = inlined_call_operand.vmem [shape: f32[2,4,16], index: 4, kind: input, shape index: {}]   ;;  %s1323_s5 = inlined_call_operand.hbm [shape: f32[16,64], index: 5, kind: input, shape index: {}]   ;;  %s1324_s6 = inlined_call_operand.hbm [shape: f32[2,4,64], index: 6, kind: input, shape index: {}]   ;;  %s1325_s7 = inlined_call_operand.hbm [shape: f32[2,4,64], index: 7, kind: output, shape index: {}]  }
   0x1   :  { %1331 = sst [smem:[#allocation20_spill]] %s1319_s1 }
   0x2   :  { %12 = vsyncpa [#allocation5], 0 }
   0x3   :  { %13 = vsyncpa [#allocation3], 0 }
   0x4   :  { %15 = vsyncpa [#allocation3 + $0x1], 0 }
   0x5   :  { %16 = vsyncpa [#allocation8], 0 }
   0x6   :  { %17 = vsyncpa [#allocation4], 0 }
   0x7   :  { %19 = vsyncpa [#allocation4 + $0x1], 0  ;;  %s1095_s24 = smov 0   ;;  %s1097_s25 = smov 0  }
   0x8   :  { %s1099_s26 = smov 0   ;;  %s1101_s27 = smov 0  }
   0x9   :  { %s1103_s28 = smov 0   ;;  %s1105_s29 = smov 0  }
   0xa LB: > { %1332 = sst [smem:[#allocation16_spill]] %s1031_s26  ;;  %s37_s30 = sadd.s32 1, %s1039_s28  ;;  %s1043_s29 = sphi %s1105_s29, %s25_s29   ;;  %s1039_s28 = sphi %s1103_s28, %s1352_s28   ;;  %s1035_s27 = sphi %s1101_s27, %s1351_s27   ;;  %s1031_s26 = sphi %s1099_s26, %s1350_s26   ;;  %s1027_s25 = sphi %s1097_s25, %s1354_s25   ;;  %s1023_s24 = sphi %s1095_s24, %s1353_s24  }
   0xb   : > { %1333 = sst [smem:[#allocation17_spill]] %s1039_s28  ;;  %s67_s8 = sadd.s32 1, %s1031_s26 }
   0xc   : > { %p39_p0 = scmp.ge.s32.totalorder %s37_s30, 2  ;;  %p74_p1 = scmp.ne.s32.totalorder %s1031_s26, %s1027_s25 }
   0xd   : > { %p75_p2 = scmp.eq.s32.totalorder %s1043_s29, 0  ;;  %p798_p5 = scmp.lt.s32.totalorder %s1043_s29, 2 }
   0xe   : > { %s1356_s30 = smov (%p39_p0, %s37_s30), 0  ;;  %s279_s10 = sand.u32 1, %s1043_s29  }
   0xf   : > { %1334 = sst [smem:[#allocation18_spill]] %s1356_s30  ;;  %p76_p4 = por %p75_p2, %p74_p1 }
  0x10   : > { %s62_s9 = ssub.s32 %s1039_s28, %s1356_s30  ;;  %s281_s11 = sand.u32 1, %s1031_s26  }
  0x11   : > { %p65_p6 = scmp.eq.s32.totalorder %s62_s9, 0  ;;  %s730_s12 = sshll.u32 %s1039_s28, 7 }
  0x12   : > { %s729_s14 = sshll.u32 %s281_s11, 3  ;;  %s1336_s1 = sld [smem:[#allocation20_spill]] }
  0x13   : > { %s1143_s13 = scalar_select %p65_p6, %s1031_s26, %s67_s8  }
  0x14   : > { %p1150_p7 = pnand %p798_p5, %p76_p4  ;;  %s283_s19 = scalar_lea.vmem [#allocation6], %s729_s14 }
  0x15   : > { %1335 = sst [smem:[#allocation19_spill]] %s1143_s13  ;;  %s291_s20 = sshll.u32 %s283_s19, 4  ;;  %s292_s20 = int_to_ptr.vmem [resolvable:$true] %s291_s20 }
  0x16   : > { %s1154_s21 = scalar_lea.sflag [#allocation3], %s279_s10  ;;  %p1330_p8 = pneg %p1150_p7 }
  0x17   : > { %s871_s22 = scalar_lea.vmem %s292_s20, 128  ;;  %s1045_s23 = smov [#allocation6]  }
  0x18   : > { %s289_s17 = scalar_lea.hbm %s1336_s1, %s730_s12  ;;  %p872_p9 = scmp.ne.s32.totalorder %s292_s20, %s871_s22 }
  0x19   : > { %s876_s8 = sshll.u32 %s1045_s23, 4  ;;  %s877_s8 = int_to_ptr.vmem [resolvable:$false] %s876_s8 }
  0x1a   : > { %p874_p10 = pnand %p872_p9, %p1330_p8  ;;  %s878_s9 = scalar_lea.vmem %s877_s8, 256 }
  0x1b   : > { %p879_p12 = scmp.lt.s32.totalorder %s292_s20, %s877_s8  ;;  %p880_p13 = scmp.lt.s32.totalorder %s878_s9, %s871_s22 }
  0x1c   : > { %p875_p11 = pneg %p874_p10 }
  0x1d   : > { %p881_p0 = por %p880_p13, %p879_p12 }
  0x1f   : > { %p882_p2 = pnand %p881_p0, %p875_p11 }
  0x21   : > { %885 = shalt.err (!%p882_p2)
}
  0x22   : > { %788 = dma.hbm_to_vmem [thread:$0]  (!%p1150_p7), %s289_s17, 128, %s292_s20, %s1154_s21  }
  0x23   : > { %s1165_s10 = sadd.s32 4294967295, %s1043_s29   ;;  %s724_s12 = sadd.s32 4294967294, %s1043_s29  }
  0x24   : > { %p80_p4 = scmp.ne.s32.totalorder %s1027_s25, %s1023_s24  ;;  %p1329_p5 = scmp.eq.s32.totalorder %s1165_s10, 0 }
  0x25   : > { %p225_p6 = scmp.eq.s32.totalorder %s1165_s10, 1  ;;  %p231_p9 = scmp.eq.s32.totalorder %s724_s12, 1 }
  0x26   : > { %p1174_p10 = por %p1329_p5, %p80_p4  ;;  %p725_p11 = scmp.ge.s32.totalorder %s1043_s29, 1 }
  0x27   : > { %p1182_p12 = por %p225_p6, %p74_p1  ;;  %p1186_p13 = por %p231_p9, %p80_p4 }
  0x28   : > { %p238_p0 = scmp.lt.s32.totalorder %s1043_s29, 3  ;;  %s731_s17 = sshll.u32 %s281_s11, 2 }
  0x29   : > { %s1046_s20 = smov [#allocation7]   ;;  %s732_s23 = sshll.u32 %s1039_s28, 6 }
  0x2a   : > { %p1193_p2 = pnand %p725_p11, %p238_p0  ;;  %s265_s22 = sshll.u32 %s1046_s20, 4  ;;  %s266_s22 = int_to_ptr.vmem [resolvable:$true] %s265_s22 }
  0x2b   : > { %s1209_s11 = scalar_lea.hbm %s1324_s6, %s732_s23  ;;  %s312_s1 = scalar_lea.vmem [#allocation9], %s731_s17 }
  0x2c   : > { %p778_p1 = pneg %p1193_p2  ;;  %s320_s30 = sshll.u32 %s312_s1, 4  ;;  %s1211_s30 = int_to_ptr.vmem [resolvable:$true] %s320_s30 }
  0x2d   : > { %s1047_s20 = smov [#allocation2]   ;;  %s908_s26 = scalar_lea.vmem %s266_s22, 256 }
  0x2e   : > { %p1202_p6 = pnand %p778_p1, %p1329_p5  ;;  %p909_p9 = scmp.ne.s32.totalorder %s266_s22, %s908_s26 }
  0x2f   : > { %p916_p1 = scmp.lt.s32.totalorder %s266_s22, %s266_s22  ;;  %p917_p3 = scmp.lt.s32.totalorder %s908_s26, %s908_s26 }
  0x30   : > { %781 = dma.hbm_to_smem (!%p1202_p6), %s1318_s0, 16, %s1047_s20, [#allocation5]  }
  0x31   : > { %p899_p4 = pneg %p1202_p6  ;;  %p918_p5 = por %p917_p3, %p916_p1 }
  0x33   : > { %p911_p11 = pnand %p909_p9, %p899_p4 }
  0x35   : > { %p912_p0 = pneg %p911_p11 }
  0x37   : > { %p919_p8 = pnand %p918_p5, %p912_p0 }
  0x39   : > { %922 = shalt.err (!%p919_p8)
}
  0x3a   : > { %s1048_s1 = smov 128   ;;  %s1049_s17 = smov 8  }
  0x3b   : > { %784 = dma.hbm_to_vmem [thread:$0]  (!%p1202_p6), %s1323_s5, 256, %s266_s22, [#allocation8], %s1048_s1, %s1048_s1, %s1049_s17  }
  0x3c   : > { %s936_s23 = scalar_lea.vmem %s1211_s30, 64  ;;  %p1343_p9 = pneg %p1150_p7 }
  0x3d   : > { %p937_p4 = scmp.ne.s32.totalorder %s1211_s30, %s936_s23  ;;  %s1050_s26 = smov [#allocation9]  }
  0x3e   : > { %s941_s9 = sshll.u32 %s1050_s26, 4  ;;  %s942_s9 = int_to_ptr.vmem [resolvable:$false] %s941_s9 }
  0x3f   : > { %p939_p11 = pnand %p937_p4, %p1343_p9  ;;  %s943_s12 = scalar_lea.vmem %s942_s9, 128 }
  0x40   : > { %p944_p8 = scmp.lt.s32.totalorder %s1211_s30, %s942_s9  ;;  %p945_p5 = scmp.lt.s32.totalorder %s943_s12, %s936_s23 }
  0x41   : > { %p940_p3 = pneg %p939_p11 }
  0x42   : > { %p946_p0 = por %p945_p5, %p944_p8 }
  0x44   : > { %p947_p1 = pnand %p946_p0, %p940_p3 }
  0x46   : > { %950 = shalt.err (!%p947_p1)
}
  0x47   : > { %791 = dma.hbm_to_vmem [thread:$0]  (!%p1150_p7), %s1209_s11, 64, %s1211_s30, %s1154_s21  }
  0x48   : > { %329 = sbr.rel (%p1193_p2) target bundleno = 307 (0x133), region = 48  ;;  %p1344_p6 = scmp.eq.s32.totalorder (!%p1193_p2), %s1165_s10, 0 }
  0x4d   : > { %1002 = dma.done.wait (%p1344_p6), [#allocation5], 16   ;;  %p1345_p4 = pmov %p1344_p6 }
  0x4e   : > { %s335_s22 = sand.u32 1, %s1165_s10   ;;  %s1244_s8 = sand.u32 1, %s1027_s25  }
  0x4f   : > { %1004 = vsyncadd (%p1345_p4), [#allocation5], 4294967280  ;;  %s735_s18 = sshll.u32 %s1244_s8, 3  ;;  %s336_s20 = scalar_lea.sflag [#allocation3], %s335_s22 }
  0x50   : > { %s339_s1 = scalar_lea.vmem [#allocation6], %s735_s18 }
  0x51   : > { %1006 = dma.done.wait (%p1174_p10), %s336_s20, 128  }
  0x52   : > { %1008 = vsyncadd (%p1174_p10), %s336_s20, 4294967168  ;;  %p1346_p7 = pmov %p1345_p4 }
  0x53   : > { %p1347_p2 = pmov %p1345_p4 }
  0x54   : > { %1010 = dma.done.wait (%p1346_p7), [#allocation8], 256  }
  0x55   : > { %1012 = vsyncadd (%p1347_p2), [#allocation8], 4294967040  ;;  %s737_s30 = sshll.u32 %s1244_s8, 2 }
  0x56   : > { %s1258_s21 = scalar_lea.vmem [#allocation9], %s737_s30 }
  0x57   : > { %1014 = dma.done.wait (%p1174_p10), %s336_s20, 64  }
  0x58   : > { %1016 = vsyncadd (%p1174_p10), %s336_s20, 4294967232 }
  0x59   : > { %357 = sfence }
  0x5a   : > { %v403_v0 = vld [vmem:[%s339_s1] sm:$0xff]  ;;  %vm411_vm0 = vcmask 64512   ;;  %v1051_v2 = vmov 0.0   ;;  %vm1052_vm1 = vmmov 0   ;;  %v487_v3 = vld [vmem:[#allocation7 + $0x8] sm:$0xff]  ;;  %p396_p9 = scmp.lt.s32.totalorder %s1035_s27, 1 }
  0x5b   : > { %v404_v1 = vld [vmem:[%s1320_s2] sm:$0xf]  ;;  %752 = vmatprep.subr.mxu0 %v1051_v2  ;;  %754 = vmatprep.mubr.msk.f32.mxu0 %vm1052_vm1, %v1051_v2  ;;  %v486_v4 = vld [vmem:[#allocation7] sm:$0xff]  ;;  %vm488_vm2 = vcmask 130048   ;;  %v1053_v6 = vmov 0   ;;  %s742_s9 = sld [smem:[#allocation2 + $0x2]] }
  0x5c   : > { %753 = vmatpush3.msra.mxu0 %v403_v0  ;;  %757 = vmatprep.subr.mxu1 %v1051_v2  ;;  %s397_s10 = scalar_select %p396_p9, %s1035_s27, 1  ;;  %v405_v5 = vld [vmem:[%s1321_s3] sm:$0xf]  ;;  %vm568_vm3 = vcmask 519168  }
  0x5d   : > { %755 = vmatmul.mubr.msk.f32.vlgmr.msra.gmra.mxu0 %vm411_vm0, %v404_v1  ;;  %758 = vmatpush3.msra.mxu1 %v487_v3  ;;  %v563_v10 = vld [vmem:[%s1258_s21] sm:$0xf]  ;;  %s744_s12 = sshll.u32 %s1035_s27, 6  ;;  %s395_s22 = scalar_lea.vmem [#allocation10], %s737_s30 }
  0x5e   : > { %759 = vmatprep.subr.mxu1 %v1051_v2  ;;  %761 = vmatprep.mubr.msk.f32.mxu1 %vm1052_vm1, %v1051_v2  ;;  %s739_s28 = sshll.u32 %s397_s10, 2  ;;  %s585_s18 = sshll.u32 %s395_s22, 4  ;;  %s586_s18 = int_to_ptr.vmem [resolvable:$true] %s585_s18 }
  0x5f   : > { %760 = vmatpush3.msra.mxu1 %v486_v4  ;;  %857 = vset.pattern.permute.xlu0 %v1053_v6  ;;  %s402_s26 = scalar_lea.vmem %s1322_s4, %s739_s28  ;;  %s583_s19 = scalar_lea.hbm %s1325_s7, %s744_s12 }
  0x60   : > { %408 = vperm.xlu0 %857, %v405_v5   ;;  %v485_v7 = vld [vmem:[%s402_s26] sm:$0xf]  ;;  %s571_s21 = scalar_lea.sflag [#allocation4], %s1244_s8  ;;  %s951_s11 = scalar_lea.vmem %s586_s18, 64 }
  0x61   : > { %762 = vmatmul.mubr.msk.f32.vlgmr.msra.gmra.mxu1 %vm488_vm2, %v485_v7  ;;  %v565_v11 = vstv %s742_s9  ;;  %p952_p10 = scmp.ne.s32.totalorder %s586_s18, %s951_s11  ;;  %s1054_s27 = smov [#allocation10]  }
  0x62   : > { %v566_v14 = vmul.f32 %v565_v11, %v563_v10  ;;  %s955_s10 = sshll.u32 %s1054_s27, 4  ;;  %s956_s10 = int_to_ptr.vmem [resolvable:$false] %s955_s10 }
  0x63   : > { %p953_p11 = pnand %p952_p10, %p1182_p12  ;;  %s957_s30 = scalar_lea.vmem %s956_s10, 128 }
  0x64   : > { %p958_p8 = scmp.lt.s32.totalorder %s586_s18, %s956_s10  ;;  %p959_p5 = scmp.lt.s32.totalorder %s957_s30, %s951_s11 }
  0x65   : > { %p954_p3 = pneg %p953_p11 }
  0x66   : > { %p960_p0 = por %p959_p5, %p958_p8 }
  0x68   : > { %p961_p1 = pnand %p960_p0, %p954_p3 }
  0xdb   : > { %v409_v8 = vpop.permute.xlu0 %408 }
 0x11d   : > { %v481_v9 = vpop.f32.mrf.mxu0 }
 0x11e   : > { %v482_v12 = vadd.f32 %v481_v9, %v409_v8 }
 0x11f   : > { %v756_v13 = vpop.f32.mrf.mxu0 }
 0x121   : > { %v558_v15 = vpop.f32.mrf.mxu1 }
 0x122   : > { %v562_v16 = vadd.f32 %v558_v15, %v482_v12 }
 0x123   : > { %v763_v17 = vpop.f32.mrf.mxu1 }
 0x124   : > { %v567_v18 = vadd.f32 %v566_v14, %v562_v16 }
 0x126   : > { %569 = vst.msk [vmem:[%s395_s22] sm:$0xf] %vm568_vm3, %v567_v18 }
 0x127   : > { %964 = shalt.err (!%p961_p1)
}
 0x128   : > { %s965_s14 = scalar_lea.hbm %s583_s19, 64  ;;  %s969_s28 = scalar_lea.hbm %s1325_s7, 128 }
 0x129   : > { %p966_p6 = scmp.ne.s32.totalorder %s583_s19, %s965_s14  ;;  %p970_p2 = scmp.lt.s32.totalorder %s583_s19, %s1325_s7 }
 0x12a   : > { %p971_p9 = scmp.lt.s32.totalorder %s969_s28, %s965_s14 }
 0x12b   : > { %p967_p4 = pnand %p966_p6, %p1182_p12 }
 0x12c   : > { %p972_p10 = por %p971_p9, %p970_p2 }
 0x12d   : > { %p968_p7 = pneg %p967_p4 }
 0x12f   : > { %p973_p11 = pnand %p972_p10, %p968_p7 }
 0x131   : > { %976 = shalt.err (!%p973_p11)
}
 0x132   : > { %776 = dma.vmem_to_hbm [thread:$0]  (%p1182_p12), %s586_s18, 64, %s583_s19, %s571_s21  }
 0x133 PF: > { %s597_s26 = sand.u32 1, %s1023_s24   ;;  %p1348_p3 = scmp.ge.s32.totalorder %s1043_s29, 2 }
 0x134   : > { %s598_s9 = scalar_lea.sflag [#allocation4], %s597_s26 }
 0x135   : > { %p793_p8 = pnand %p1348_p3, %p1186_p13 }
 0x137   : > { %p794_p5 = pneg %p793_p8 }
 0x139   : > { %1018 = dma.done.wait (%p794_p5), %s598_s9, 64  }
 0x13a   : > { %1020 = vsyncadd (%p794_p5), %s598_s9, 4294967232  ;;  %s25_s29 = sadd.s32 1, %s1043_s29   ;;  %s1349_s12 = sld [smem:[#allocation16_spill]] }
 0x13b   : > { %p22_p0 = scmp.ge.s32.totalorder %s25_s29, 4   ;;  %s1350_s26 = sld [smem:[#allocation19_spill]] }
 0x13c   : > { %s1351_s27 = sld [smem:[#allocation17_spill]]  ;;  %s1353_s24 = smov %s1027_s25 }
 0x13d   : > { %s1352_s28 = sld [smem:[#allocation18_spill]]  ;;  %24 = sbr.rel (!%p22_p0) target bundleno = 10 (0xa), region = 116 }
 0x140   : > { %s1354_s25 = smov %s1349_s12 }
 0x142   :  { %603 = vsyncpa [#allocation3], 1 }
 0x143   :  { %605 = vsyncpa [#allocation3 + $0x1], 1 }
 0x144   :  { %606 = vsyncpa [#allocation8], 1 }
 0x145   :  { %607 = vsyncpa [#allocation4], 1 }
 0x146   :  { %609 = vsyncpa [#allocation4 + $0x1], 1 }
 0x147   :  { %610 = vsyncpa [#allocation5], 1 }
 0x148   :  { %612 = vsyncpa [#allocation5 + $0x1], 1 }

// kernel: tpu_custom_call.1
= control target key start
LH: loop header
LB: loop body
LE: loop exit
PB: predicated region body
PF: predicated region fallthrough
CT: control target
= control target key end

     0   :  { %s1318_s0 = inlined_call_operand.hbm [shape: f32[3], index: 0, kind: input, shape index: {}]   ;;  %s1319_s1 = inlined_call_operand.hbm [shape: f32[2,8,64], index: 1, kind: input, shape index: {}]   ;;  %s1320_s2 = inlined_call_operand.vmem [shape: f32[4,8], index: 2, kind: input, shape index: {}]   ;;  %s1321_s3 = inlined_call_operand.vmem [shape: f32[4,1], index: 3, kind: input, shape index: {}]   ;;  %s1322_s4 = inlined_call_operand.vmem [shape: f32[2,4,16], index: 4, kind: input, shape index: {}]   ;;  %s1323_s5 = inlined_call_operand.hbm [shape: f32[16,64], index: 5, kind: input, shape index: {}]   ;;  %s1324_s6 = inlined_call_operand.hbm [shape: f32[2,4,64], index: 6, kind: input, shape index: {}]   ;;  %s1325_s7 = inlined_call_operand.hbm [shape: f32[2,4,64], index: 7, kind: output, shape index: {}]  }
   0x1   :  { %1331 = sst [smem:[#allocation20_spill]] %s1319_s1 }
   0x2   :  { %12 = vsyncpa [#allocation5], 0 }
   0x3   :  { %13 = vsyncpa [#allocation3], 0 }
   0x4   :  { %15 = vsyncpa [#allocation3 + $0x1], 0 }
   0x5   :  { %16 = vsyncpa [#allocation8], 0 }
   0x6   :  { %17 = vsyncpa [#allocation4], 0 }
   0x7   :  { %19 = vsyncpa [#allocation4 + $0x1], 0  ;;  %s1095_s24 = smov 0   ;;  %s1097_s25 = smov 0  }
   0x8   :  { %s1099_s26 = smov 0   ;;  %s1101_s27 = smov 0  }
   0x9   :  { %s1103_s28 = smov 0   ;;  %s1105_s29 = smov 0  }
   0xa LB: > { %1332 = sst [smem:[#allocation16_spill]] %s1031_s26  ;;  %s37_s30 = sadd.s32 1, %s1039_s28  ;;  %s1043_s29 = sphi %s1105_s29, %s25_s29   ;;  %s1039_s28 = sphi %s1103_s28, %s1352_s28   ;;  %s1035_s27 = sphi %s1101_s27, %s1351_s27   ;;  %s1031_s26 = sphi %s1099_s26, %s1350_s26   ;;  %s1027_s25 = sphi %s1097_s25, %s1354_s25   ;;  %s1023_s24 = sphi %s1095_s24, %s1353_s24  }
   0xb   : > { %1333 = sst [smem:[#allocation17_spill]] %s1039_s28  ;;  %s67_s8 = sadd.s32 1, %s1031_s26 }
   0xc   : > { %p39_p0 = scmp.ge.s32.totalorder %s37_s30, 2  ;;  %p74_p1 = scmp.ne.s32.totalorder %s1031_s26, %s1027_s25 }
   0xd   : > { %p75_p2 = scmp.eq.s32.totalorder %s1043_s29, 0  ;;  %p798_p5 = scmp.lt.s32.totalorder %s1043_s29, 2 }
   0xe   : > { %s1356_s30 = smov (%p39_p0, %s37_s30), 0  ;;  %s279_s10 = sand.u32 1, %s1043_s29  }
   0xf   : > { %1334 = sst [smem:[#allocation18_spill]] %s1356_s30  ;;  %p76_p4 = por %p75_p2, %p74_p1 }
  0x10   : > { %s62_s9 = ssub.s32 %s1039_s28, %s1356_s30  ;;  %s281_s11 = sand.u32 1, %s1031_s26  }
  0x11   : > { %p65_p6 = scmp.eq.s32.totalorder %s62_s9, 0  ;;  %s730_s12 = sshll.u32 %s1039_s28, 7 }
  0x12   : > { %s729_s14 = sshll.u32 %s281_s11, 3  ;;  %s1336_s1 = sld [smem:[#allocation20_spill]] }
  0x13   : > { %s1143_s13 = scalar_select %p65_p6, %s1031_s26, %s67_s8  }
  0x14   : > { %p1150_p7 = pnand %p798_p5, %p76_p4  ;;  %s283_s19 = scalar_lea.vmem [#allocation6], %s729_s14 }
  0x15   : > { %1335 = sst [smem:[#allocation19_spill]] %s1143_s13  ;;  %s291_s20 = sshll.u32 %s283_s19, 4  ;;  %s292_s20 = int_to_ptr.vmem [resolvable:$true] %s291_s20 }
  0x16   : > { %s1154_s21 = scalar_lea.sflag [#allocation3], %s279_s10  ;;  %p1330_p8 = pneg %p1150_p7 }
  0x17   : > { %s871_s22 = scalar_lea.vmem %s292_s20, 128  ;;  %s1045_s23 = smov [#allocation6]  }
  0x18   : > { %s289_s17 = scalar_lea.hbm %s1336_s1, %s730_s12  ;;  %p872_p9 = scmp.ne.s32.totalorder %s292_s20, %s871_s22 }
  0x19   : > { %s876_s8 = sshll.u32 %s1045_s23, 4  ;;  %s877_s8 = int_to_ptr.vmem [resolvable:$false] %s876_s8 }
  0x1a   : > { %p874_p10 = pnand %p872_p9, %p1330_p8  ;;  %s878_s9 = scalar_lea.vmem %s877_s8, 256 }
  0x1b   : > { %p879_p12 = scmp.lt.s32.totalorder %s292_s20, %s877_s8  ;;  %p880_p13 = scmp.lt.s32.totalorder %s878_s9, %s871_s22 }
  0x1c   : > { %p875_p11 = pneg %p874_p10 }
  0x1d   : > { %p881_p0 = por %p880_p13, %p879_p12 }
  0x1f   : > { %p882_p2 = pnand %p881_p0, %p875_p11 }
  0x21   : > { %885 = shalt.err (!%p882_p2)
}
  0x22   : > { %788 = dma.hbm_to_vmem [thread:$0]  (!%p1150_p7), %s289_s17, 128, %s292_s20, %s1154_s21  }
  0x23   : > { %s1165_s10 = sadd.s32 4294967295, %s1043_s29   ;;  %s724_s12 = sadd.s32 4294967294, %s1043_s29  }
  0x24   : > { %p80_p4 = scmp.ne.s32.totalorder %s1027_s25, %s1023_s24  ;;  %p1329_p5 = scmp.eq.s32.totalorder %s1165_s10, 0 }
  0x25   : > { %p225_p6 = scmp.eq.s32.totalorder %s1165_s10, 1  ;;  %p231_p9 = scmp.eq.s32.totalorder %s724_s12, 1 }
  0x26   : > { %p1174_p10 = por %p1329_p5, %p80_p4  ;;  %p725_p11 = scmp.ge.s32.totalorder %s1043_s29, 1 }
  0x27   : > { %p1182_p12 = por %p225_p6, %p74_p1  ;;  %p1186_p13 = por %p231_p9, %p80_p4 }
  0x28   : > { %p238_p0 = scmp.lt.s32.totalorder %s1043_s29, 3  ;;  %s731_s17 = sshll.u32 %s281_s11, 2 }
  0x29   : > { %s1046_s20 = smov [#allocation7]   ;;  %s732_s23 = sshll.u32 %s1039_s28, 6 }
  0x2a   : > { %p1193_p2 = pnand %p725_p11, %p238_p0  ;;  %s265_s22 = sshll.u32 %s1046_s20, 4  ;;  %s266_s22 = int_to_ptr.vmem [resolvable:$true] %s265_s22 }
  0x2b   : > { %s1209_s11 = scalar_lea.hbm %s1324_s6, %s732_s23  ;;  %s312_s1 = scalar_lea.vmem [#allocation9], %s731_s17 }
  0x2c   : > { %p778_p1 = pneg %p1193_p2  ;;  %s320_s30 = sshll.u32 %s312_s1, 4  ;;  %s1211_s30 = int_to_ptr.vmem [resolvable:$true] %s320_s30 }
  0x2d   : > { %s1047_s20 = smov [#allocation2]   ;;  %s908_s26 = scalar_lea.vmem %s266_s22, 256 }
  0x2e   : > { %p1202_p6 = pnand %p778_p1, %p1329_p5  ;;  %p909_p9 = scmp.ne.s32.totalorder %s266_s22, %s908_s26 }
  0x2f   : > { %p916_p1 = scmp.lt.s32.totalorder %s266_s22, %s266_s22  ;;  %p917_p3 = scmp.lt.s32.totalorder %s908_s26, %s908_s26 }
  0x30   : > { %781 = dma.hbm_to_smem (!%p1202_p6), %s1318_s0, 16, %s1047_s20, [#allocation5]  }
  0x31   : > { %p899_p4 = pneg %p1202_p6  ;;  %p918_p5 = por %p917_p3, %p916_p1 }
  0x33   : > { %p911_p11 = pnand %p909_p9, %p899_p4 }
  0x35   : > { %p912_p0 = pneg %p911_p11 }
  0x37   : > { %p919_p8 = pnand %p918_p5, %p912_p0 }
  0x39   : > { %922 = shalt.err (!%p919_p8)
}
  0x3a   : > { %s1048_s1 = smov 128   ;;  %s1049_s17 = smov 8  }
  0x3b   : > { %784 = dma.hbm_to_vmem [thread:$0]  (!%p1202_p6), %s1323_s5, 256, %s266_s22, [#allocation8], %s1048_s1, %s1048_s1, %s1049_s17  }
  0x3c   : > { %s936_s23 = scalar_lea.vmem %s1211_s30, 64  ;;  %p1343_p9 = pneg %p1150_p7 }
  0x3d   : > { %p937_p4 = scmp.ne.s32.totalorder %s1211_s30, %s936_s23  ;;  %s1050_s26 = smov [#allocation9]  }
  0x3e   : > { %s941_s9 = sshll.u32 %s1050_s26, 4  ;;  %s942_s9 = int_to_ptr.vmem [resolvable:$false] %s941_s9 }
  0x3f   : > { %p939_p11 = pnand %p937_p4, %p1343_p9  ;;  %s943_s12 = scalar_lea.vmem %s942_s9, 128 }
  0x40   : > { %p944_p8 = scmp.lt.s32.totalorder %s1211_s30, %s942_s9  ;;  %p945_p5 = scmp.lt.s32.totalorder %s943_s12, %s936_s23 }
  0x41   : > { %p940_p3 = pneg %p939_p11 }
  0x42   : > { %p946_p0 = por %p945_p5, %p944_p8 }
  0x44   : > { %p947_p1 = pnand %p946_p0, %p940_p3 }
  0x46   : > { %950 = shalt.err (!%p947_p1)
}
  0x47   : > { %791 = dma.hbm_to_vmem [thread:$0]  (!%p1150_p7), %s1209_s11, 64, %s1211_s30, %s1154_s21  }
  0x48   : > { %329 = sbr.rel (%p1193_p2) target bundleno = 307 (0x133), region = 48  ;;  %p1344_p6 = scmp.eq.s32.totalorder (!%p1193_p2), %s1165_s10, 0 }
  0x4d   : > { %1002 = dma.done.wait (%p1344_p6), [#allocation5], 16   ;;  %p1345_p4 = pmov %p1344_p6 }
  0x4e   : > { %s335_s22 = sand.u32 1, %s1165_s10   ;;  %s1244_s8 = sand.u32 1, %s1027_s25  }
  0x4f   : > { %1004 = vsyncadd (%p1345_p4), [#allocation5], 4294967280  ;;  %s735_s18 = sshll.u32 %s1244_s8, 3  ;;  %s336_s20 = scalar_lea.sflag [#allocation3], %s335_s22 }
  0x50   : > { %s339_s1 = scalar_lea.vmem [#allocation6], %s735_s18 }
  0x51   : > { %1006 = dma.done.wait (%p1174_p10), %s336_s20, 128  }
  0x52   : > { %1008 = vsyncadd (%p1174_p10), %s336_s20, 4294967168  ;;  %p1346_p7 = pmov %p1345_p4 }
  0x53   : > { %p1347_p2 = pmov %p1345_p4 }
  0x54   : > { %1010 = dma.done.wait (%p1346_p7), [#allocation8], 256  }
  0x55   : > { %1012 = vsyncadd (%p1347_p2), [#allocation8], 4294967040  ;;  %s737_s30 = sshll.u32 %s1244_s8, 2 }
  0x56   : > { %s1258_s21 = scalar_lea.vmem [#allocation9], %s737_s30 }
  0x57   : > { %1014 = dma.done.wait (%p1174_p10), %s336_s20, 64  }
  0x58   : > { %1016 = vsyncadd (%p1174_p10), %s336_s20, 4294967232 }
  0x59   : > { %357 = sfence }
  0x5a   : > { %v403_v0 = vld [vmem:[%s339_s1] sm:$0xff]  ;;  %vm411_vm0 = vcmask 64512   ;;  %v1051_v2 = vmov 0.0   ;;  %vm1052_vm1 = vmmov 0   ;;  %v487_v3 = vld [vmem:[#allocation7 + $0x8] sm:$0xff]  ;;  %p396_p9 = scmp.lt.s32.totalorder %s1035_s27, 1 }
  0x5b   : > { %v404_v1 = vld [vmem:[%s1320_s2] sm:$0xf]  ;;  %752 = vmatprep.subr.mxu0 %v1051_v2  ;;  %754 = vmatprep.mubr.msk.f32.mxu0 %vm1052_vm1, %v1051_v2  ;;  %v486_v4 = vld [vmem:[#allocation7] sm:$0xff]  ;;  %vm488_vm2 = vcmask 130048   ;;  %v1053_v6 = vmov 0   ;;  %s742_s9 = sld [smem:[#allocation2 + $0x2]] }
  0x5c   : > { %753 = vmatpush3.msra.mxu0 %v403_v0  ;;  %757 = vmatprep.subr.mxu1 %v1051_v2  ;;  %s397_s10 = scalar_select %p396_p9, %s1035_s27, 1  ;;  %v405_v5 = vld [vmem:[%s1321_s3] sm:$0xf]  ;;  %vm568_vm3 = vcmask 519168  }
  0x5d   : > { %755 = vmatmul.mubr.msk.f32.vlgmr.msra.gmra.mxu0 %vm411_vm0, %v404_v1  ;;  %758 = vmatpush3.msra.mxu1 %v487_v3  ;;  %v563_v10 = vld [vmem:[%s1258_s21] sm:$0xf]  ;;  %s744_s12 = sshll.u32 %s1035_s27, 6  ;;  %s395_s22 = scalar_lea.vmem [#allocation10], %s737_s30 }
  0x5e   : > { %759 = vmatprep.subr.mxu1 %v1051_v2  ;;  %761 = vmatprep.mubr.msk.f32.mxu1 %vm1052_vm1, %v1051_v2  ;;  %s739_s28 = sshll.u32 %s397_s10, 2  ;;  %s585_s18 = sshll.u32 %s395_s22, 4  ;;  %s586_s18 = int_to_ptr.vmem [resolvable:$true] %s585_s18 }
  0x5f   : > { %760 = vmatpush3.msra.mxu1 %v486_v4  ;;  %857 = vset.pattern.permute.xlu0 %v1053_v6  ;;  %s402_s26 = scalar_lea.vmem %s1322_s4, %s739_s28  ;;  %s583_s19 = scalar_lea.hbm %s1325_s7, %s744_s12 }
  0x60   : > { %408 = vperm.xlu0 %857, %v405_v5   ;;  %v485_v7 = vld [vmem:[%s402_s26] sm:$0xf]  ;;  %s571_s21 = scalar_lea.sflag [#allocation4], %s1244_s8  ;;  %s951_s11 = scalar_lea.vmem %s586_s18, 64 }
  0x61   : > { %762 = vmatmul.mubr.msk.f32.vlgmr.msra.gmra.mxu1 %vm488_vm2, %v485_v7  ;;  %v565_v11 = vstv %s742_s9  ;;  %p952_p10 = scmp.ne.s32.totalorder %s586_s18, %s951_s11  ;;  %s1054_s27 = smov [#allocation10]  }
  0x62   : > { %v566_v14 = vmul.f32 %v565_v11, %v563_v10  ;;  %s955_s10 = sshll.u32 %s1054_s27, 4  ;;  %s956_s10 = int_to_ptr.vmem [resolvable:$false] %s955_s10 }
  0x63   : > { %p953_p11 = pnand %p952_p10, %p1182_p12  ;;  %s957_s30 = scalar_lea.vmem %s956_s10, 128 }
  0x64   : > { %p958_p8 = scmp.lt.s32.totalorder %s586_s18, %s956_s10  ;;  %p959_p5 = scmp.lt.s32.totalorder %s957_s30, %s951_s11 }
  0x65   : > { %p954_p3 = pneg %p953_p11 }
  0x66   : > { %p960_p0 = por %p959_p5, %p958_p8 }
  0x68   : > { %p961_p1 = pnand %p960_p0, %p954_p3 }
  0xdb   : > { %v409_v8 = vpop.permute.xlu0 %408 }
 0x11d   : > { %v481_v9 = vpop.f32.mrf.mxu0 }
 0x11e   : > { %v482_v12 = vadd.f32 %v481_v9, %v409_v8 }
 0x11f   : > { %v756_v13 = vpop.f32.mrf.mxu0 }
 0x121   : > { %v558_v15 = vpop.f32.mrf.mxu1 }
 0x122   : > { %v562_v16 = vadd.f32 %v558_v15, %v482_v12 }
 0x123   : > { %v763_v17 = vpop.f32.mrf.mxu1 }
 0x124   : > { %v567_v18 = vadd.f32 %v566_v14, %v562_v16 }
 0x126   : > { %569 = vst.msk [vmem:[%s395_s22] sm:$0xf] %vm568_vm3, %v567_v18 }
 0x127   : > { %964 = shalt.err (!%p961_p1)
}
 0x128   : > { %s965_s14 = scalar_lea.hbm %s583_s19, 64  ;;  %s969_s28 = scalar_lea.hbm %s1325_s7, 128 }
 0x129   : > { %p966_p6 = scmp.ne.s32.totalorder %s583_s19, %s965_s14  ;;  %p970_p2 = scmp.lt.s32.totalorder %s583_s19, %s1325_s7 }
 0x12a   : > { %p971_p9 = scmp.lt.s32.totalorder %s969_s28, %s965_s14 }
 0x12b   : > { %p967_p4 = pnand %p966_p6, %p1182_p12 }
 0x12c   : > { %p972_p10 = por %p971_p9, %p970_p2 }
 0x12d   : > { %p968_p7 = pneg %p967_p4 }
 0x12f   : > { %p973_p11 = pnand %p972_p10, %p968_p7 }
 0x131   : > { %976 = shalt.err (!%p973_p11)
}
 0x132   : > { %776 = dma.vmem_to_hbm [thread:$0]  (%p1182_p12), %s586_s18, 64, %s583_s19, %s571_s21  }
 0x133 PF: > { %s597_s26 = sand.u32 1, %s1023_s24   ;;  %p1348_p3 = scmp.ge.s32.totalorder %s1043_s29, 2 }
 0x134   : > { %s598_s9 = scalar_lea.sflag [#allocation4], %s597_s26 }
 0x135   : > { %p793_p8 = pnand %p1348_p3, %p1186_p13 }
 0x137   : > { %p794_p5 = pneg %p793_p8 }
 0x139   : > { %1018 = dma.done.wait (%p794_p5), %s598_s9, 64  }
 0x13a   : > { %1020 = vsyncadd (%p794_p5), %s598_s9, 4294967232  ;;  %s25_s29 = sadd.s32 1, %s1043_s29   ;;  %s1349_s12 = sld [smem:[#allocation16_spill]] }
 0x13b   : > { %p22_p0 = scmp.ge.s32.totalorder %s25_s29, 4   ;;  %s1350_s26 = sld [smem:[#allocation19_spill]] }
 0x13c   : > { %s1351_s27 = sld [smem:[#allocation17_spill]]  ;;  %s1353_s24 = smov %s1027_s25 }
 0x13d   : > { %s1352_s28 = sld [smem:[#allocation18_spill]]  ;;  %24 = sbr.rel (!%p22_p0) target bundleno = 10 (0xa), region = 116 }
 0x140   : > { %s1354_s25 = smov %s1349_s12 }
 0x142   :  { %603 = vsyncpa [#allocation3], 1 }
 0x143   :  { %605 = vsyncpa [#allocation3 + $0x1], 1 }
 0x144   :  { %606 = vsyncpa [#allocation8], 1 }
 0x145   :  { %607 = vsyncpa [#allocation4], 1 }
 0x146   :  { %609 = vsyncpa [#allocation4 + $0x1], 1 }
 0x147   :  { %610 = vsyncpa [#allocation5], 1 }
 0x148   :  { %612 = vsyncpa [#allocation5 + $0x1], 1 }

</bundles_post_ra>
